<compile_context>
chip_gen: v7x
topology: tpu7x:2x2x1
jax: 0.10.0
libtpu: 0.0.40
codegen_flags: <defaults>
</compile_context>

<pallas_src>
import functools

import jax
import jax.numpy as jnp
from jax.experimental import pallas as pl
from jax.experimental.pallas import tpu as pltpu


def _round_up(x, m):
    return ((x + m - 1) // m) * m


def _gmm_kernel(x_ref, w1_ref, b1_ref, w2_ref, b2_ref,
                w3l_ref, b3l_ref, w3m_ref, b3m_ref, w3s_ref, b3s_ref,
                logits_ref, mu_ref, sigma_ref):
    """One batch tile of the fused MLP + GMM head.

    x_ref:   (TILE_B, obs_dim)     bf16  (pipelined per grid step)
    w*_ref:  (in, out)             bf16  (resident in VMEM across grid steps)
    b*_ref:  (1, out)              f32   (resident)
    logits_ref: (TILE_B, G)        f32
    mu_ref:     (TILE_B, G*A)      f32
    sigma_ref:  (TILE_B, G*A)      f32
    """
    # --- MLP trunk: MXU matmuls (bf16 in, f32 acc) + f32 bias/ReLU on VPU ---
    h = jnp.dot(x_ref[...], w1_ref[...], preferred_element_type=jnp.float32)
    h = jnp.maximum(h + b1_ref[...], 0.0).astype(w2_ref.dtype)

    h = jnp.dot(h, w2_ref[...], preferred_element_type=jnp.float32)
    h = jnp.maximum(h + b2_ref[...], 0.0).astype(w3l_ref.dtype)

    # --- GMM heads: three small matmuls (no in-kernel column slicing) ---
    logits_ref[...] = (
        jnp.dot(h, w3l_ref[...], preferred_element_type=jnp.float32)
        + b3l_ref[...])
    mu_ref[...] = (
        jnp.dot(h, w3m_ref[...], preferred_element_type=jnp.float32)
        + b3m_ref[...])
    log_sigma = (
        jnp.dot(h, w3s_ref[...], preferred_element_type=jnp.float32)
        + b3s_ref[...])
    sigma_ref[...] = jnp.exp(jnp.clip(log_sigma, -5.0, 2.0))   # EUP exp, f32


def gmm_layer_forward(x, params, *, num_gaussians, action_dim, tile_b=1024):
    """Pallas forward of GMMLayer.

    x: (B, obs_dim) float32
    params: (w1, b1, w2, b2, w3, b3) with w_i stored (in, out), b_i (1, out)
    returns: logits (B, G), mu (B, G, A), sigma (B, G, A)
    """
    w1, b1, w2, b2, w3, b3 = params
    B, obs_dim = x.shape
    G, A = num_gaussians, action_dim
    GA = G * A
    out_dim = G + 2 * GA
    h1, h2 = w1.shape[1], w2.shape[1]

    # --- Batch tiling ---------------------------------------------------
    # Multiple of 16 sublanes (bf16 packs 2 rows/sublane), capped at the
    # requested tile, and capped again so the grid keeps >= 2 steps whenever
    # the batch is large enough (megacore on v7x; harmless on v5e/v6e).
    tile_b = min(tile_b, _round_up(max(B, 16), 16))
    two_step_tile = max(16, _round_up(-(-B // 2), 16))
    tile_b = min(tile_b, two_step_tile)
    b_pad = _round_up(B, tile_b)
    if b_pad != B:
        x = jnp.pad(x, ((0, b_pad - B), (0, 0)))

    # --- Lane-dense hidden layers ----------------------------------------
    # Zero-pad hidden widths to a multiple of 128: padded columns produce 0
    # pre-activations (zero weights + zero bias), stay 0 through ReLU, and the
    # matching padded weight rows of the next layer are zero -> exact result.
    h1p = _round_up(h1, 128)
    h2p = _round_up(h2, 128)
    if h1p != h1:
        w1 = jnp.pad(w1, ((0, 0), (0, h1p - h1)))
        b1 = jnp.pad(b1, ((0, 0), (0, h1p - h1)))
        w2 = jnp.pad(w2, ((0, h1p - h1), (0, 0)))
    if h2p != h2:
        w2 = jnp.pad(w2, ((0, 0), (0, h2p - h2)))
        b2 = jnp.pad(b2, ((0, 0), (0, h2p - h2)))
        w3 = jnp.pad(w3, ((0, h2p - h2), (0, 0)))

    # Split the final layer per head (done once on tiny arrays) so the kernel
    # writes the three heads directly -> no post-kernel column slicing.
    w3l, w3m, w3s = w3[:, :G], w3[:, G:G + GA], w3[:, G + GA:G + 2 * GA]
    b3l, b3m, b3s = b3[:, :G], b3[:, G:G + GA], b3[:, G + GA:G + 2 * GA]

    # bf16 for MXU operands; biases / elementwise path stay f32.
    xb = x.astype(jnp.bfloat16)
    w1b = w1.astype(jnp.bfloat16)
    w2b = w2.astype(jnp.bfloat16)
    w3lb = w3l.astype(jnp.bfloat16)
    w3mb = w3m.astype(jnp.bfloat16)
    w3sb = w3s.astype(jnp.bfloat16)

    grid = (b_pad // tile_b,)

    def resident(arr):
        # Full-array block, same block every grid step -> stays in VMEM.
        return pl.BlockSpec(arr.shape, lambda i: (0,) * arr.ndim)

    in_specs = [
        pl.BlockSpec((tile_b, obs_dim), lambda i: (i, 0)),   # x tile (pipelined)
        resident(w1b), resident(b1),
        resident(w2b), resident(b2),
        resident(w3lb), resident(b3l),
        resident(w3mb), resident(b3m),
        resident(w3sb), resident(b3s),
    ]
    out_specs = [
        pl.BlockSpec((tile_b, G), lambda i: (i, 0)),
        pl.BlockSpec((tile_b, GA), lambda i: (i, 0)),
        pl.BlockSpec((tile_b, GA), lambda i: (i, 0)),
    ]
    out_shape = (
        jax.ShapeDtypeStruct((b_pad, G), jnp.float32),
        jax.ShapeDtypeStruct((b_pad, GA), jnp.float32),
        jax.ShapeDtypeStruct((b_pad, GA), jnp.float32),
    )

    flops = 2 * b_pad * (obs_dim * h1p + h1p * h2p + h2p * out_dim)
    bytes_accessed = (
        xb.size * 2
        + (w1b.size + w2b.size + w3lb.size + w3mb.size + w3sb.size) * 2
        + (b1.size + b2.size + b3l.size + b3m.size + b3s.size) * 4
        + b_pad * out_dim * 4)
    cost = pl.CostEstimate(
        flops=flops,
        transcendentals=b_pad * GA,
        bytes_accessed=bytes_accessed)

    logits_p, mu_p, sigma_p = pl.pallas_call(
        _gmm_kernel,
        grid=grid,
        out_shape=out_shape,
        in_specs=in_specs,
        out_specs=out_specs,
        compiler_params=pltpu.CompilerParams(
            dimension_semantics=("parallel",)),
        cost_estimate=cost,
    )(xb, w1b, b1, w2b, b2, w3lb, b3l, w3mb, b3m, w3sb, b3s)

    # Row-slice is a no-op when B is a tile multiple; reshapes are free.
    logits = logits_p[:B]
    mu = mu_p[:B].reshape(B, G, A)
    sigma = sigma_p[:B].reshape(B, G, A)
    return logits, mu, sigma


def gmm_layer_reference(x, params, *, num_gaussians, action_dim):
    """Pure-JAX f32 reference matching the PyTorch module."""
    w1, b1, w2, b2, w3, b3 = params
    G, A = num_gaussians, action_dim
    GA = G * A
    h = jnp.maximum(x @ w1 + b1, 0.0)
    h = jnp.maximum(h @ w2 + b2, 0.0)
    out = h @ w3 + b3
    logits = out[:, :G]
    mu = out[:, G:G + GA].reshape(-1, G, A)
    sigma = jnp.exp(jnp.clip(out[:, G + GA:G + 2 * GA], -5.0, 2.0)).reshape(-1, G, A)
    return logits, mu, sigma


def init_gmm_params(key, obs_dim, action_dim, num_gaussians, hidden_dims):
    """Deterministic init matching torch.nn.Linear default (U[-1/sqrt(in), 1/sqrt(in)])."""
    out_dim = 2 * num_gaussians * action_dim + num_gaussians
    dims = [obs_dim] + list(hidden_dims) + [out_dim]
    params = []
    for i in range(len(dims) - 1):
        fan_in, fan_out = dims[i], dims[i + 1]
        key, kw, kb = jax.random.split(key, 3)
        bound = 1.0 / (fan_in ** 0.5)
        w = jax.random.uniform(kw, (fan_in, fan_out), jnp.float32, -bound, bound)
        b = jax.random.uniform(kb, (1, fan_out), jnp.float32, -bound, bound)
        params.extend([w, b])
    return tuple(params)


if __name__ == "__main__":
    # Small, forward-consistent shapes.
    B, obs_dim, action_dim, num_gaussians = 8, 32, 4, 4
    hidden_dims = (64, 64)

    key = jax.random.PRNGKey(0)
    key, kx = jax.random.split(key)
    x = jax.random.normal(kx, (B, obs_dim), jnp.float32)
    params = init_gmm_params(key, obs_dim, action_dim, num_gaussians, hidden_dims)

    fwd = jax.jit(functools.partial(
        gmm_layer_forward, num_gaussians=num_gaussians, action_dim=action_dim))
    logits, mu, sigma = fwd(x, params)
    jax.block_until_ready((logits, mu, sigma))

    # Sanity: shapes, sigma positivity, and agreement with the f32 reference
    # (bf16 MXU operands -> loose tolerance).
    assert logits.shape == (B, num_gaussians)
    assert mu.shape == (B, num_gaussians, action_dim)
    assert sigma.shape == (B, num_gaussians, action_dim)
    assert bool(jnp.all(sigma > 0.0))

    ref_logits, ref_mu, ref_sigma = gmm_layer_reference(
        x, params, num_gaussians=num_gaussians, action_dim=action_dim)
    assert bool(jnp.allclose(logits, ref_logits, rtol=5e-2, atol=5e-2))
    assert bool(jnp.allclose(mu, ref_mu, rtol=5e-2, atol=5e-2))
    assert bool(jnp.allclose(sigma, ref_sigma, rtol=5e-2, atol=5e-2))

    print("KERNEL_OK")
</pallas_src>

<mosaic_0001>
module attributes {stable_mosaic.version = 11 : i64} {
  func.func @_gmm_kernel(%arg0: i32, %arg1: memref<16x32xbf16, #tpu.memory_space<vmem>>, %arg2: memref<32x128xbf16, #tpu.memory_space<vmem>>, %arg3: memref<1x128xf32, #tpu.memory_space<vmem>>, %arg4: memref<128x128xbf16, #tpu.memory_space<vmem>>, %arg5: memref<1x128xf32, #tpu.memory_space<vmem>>, %arg6: memref<128x4xbf16, #tpu.memory_space<vmem>>, %arg7: memref<1x4xf32, #tpu.memory_space<vmem>>, %arg8: memref<128x16xbf16, #tpu.memory_space<vmem>>, %arg9: memref<1x16xf32, #tpu.memory_space<vmem>>, %arg10: memref<128x16xbf16, #tpu.memory_space<vmem>>, %arg11: memref<1x16xf32, #tpu.memory_space<vmem>>, %arg12: memref<16x4xf32, #tpu.memory_space<vmem>>, %arg13: memref<16x16xf32, #tpu.memory_space<vmem>>, %arg14: memref<16x16xf32, #tpu.memory_space<vmem>>) attributes {dimension_semantics = [#tpu.dimension_semantics<parallel>], iteration_bounds = array<i64: 1>, scalar_prefetch = 0 : i64, scratch_operands = 0 : i64, tpu.core_type = #tpu.core_type<tc>, window_params = [{transform_indices = @transform_0, window_bounds = array<i64: 16, 32>}, {pipeline_mode = #tpu.pipeline_mode<synchronous>, transform_indices = @transform_1, window_bounds = array<i64: 32, 128>}, {pipeline_mode = #tpu.pipeline_mode<synchronous>, transform_indices = @transform_2, window_bounds = array<i64: 1, 128>}, {pipeline_mode = #tpu.pipeline_mode<synchronous>, transform_indices = @transform_3, window_bounds = array<i64: 128, 128>}, {pipeline_mode = #tpu.pipeline_mode<synchronous>, transform_indices = @transform_4, window_bounds = array<i64: 1, 128>}, {pipeline_mode = #tpu.pipeline_mode<synchronous>, transform_indices = @transform_5, window_bounds = array<i64: 128, 4>}, {pipeline_mode = #tpu.pipeline_mode<synchronous>, transform_indices = @transform_6, window_bounds = array<i64: 1, 4>}, {pipeline_mode = #tpu.pipeline_mode<synchronous>, transform_indices = @transform_7, window_bounds = array<i64: 128, 16>}, {pipeline_mode = #tpu.pipeline_mode<synchronous>, transform_indices = @transform_8, window_bounds = array<i64: 1, 16>}, {pipeline_mode = #tpu.pipeline_mode<synchronous>, transform_indices = @transform_9, window_bounds = array<i64: 128, 16>}, {pipeline_mode = #tpu.pipeline_mode<synchronous>, transform_indices = @transform_10, window_bounds = array<i64: 1, 16>}, {transform_indices = @transform_11, window_bounds = array<i64: 16, 4>}, {transform_indices = @transform_12, window_bounds = array<i64: 16, 16>}, {transform_indices = @transform_13, window_bounds = array<i64: 16, 16>}]} {
    %c0 = arith.constant 0 : index
    %c0_0 = arith.constant 0 : index
    %0 = vector.load %arg1[%c0, %c0_0] : memref<16x32xbf16, #tpu.memory_space<vmem>>, vector<16x32xbf16>
    %c0_1 = arith.constant 0 : index
    %c0_2 = arith.constant 0 : index
    %1 = vector.load %arg2[%c0_1, %c0_2] : memref<32x128xbf16, #tpu.memory_space<vmem>>, vector<32x128xbf16>
    %cst = arith.constant dense<0.000000e+00> : vector<16x128xf32>
    %2 = tpu.matmul %0, %1, %cst {dimension_numbers = #tpu.dot_dimension_numbers<[1], [0], [0], [1], [0, 0, 1, 1], [], []>} : vector<16x32xbf16>, vector<32x128xbf16>, vector<16x128xf32> -> vector<16x128xf32>
    %c0_3 = arith.constant 0 : index
    %c0_4 = arith.constant 0 : index
    %3 = vector.load %arg3[%c0_3, %c0_4] : memref<1x128xf32, #tpu.memory_space<vmem>>, vector<1x128xf32>
    %4 = vector.broadcast %3 : vector<1x128xf32> to vector<16x128xf32>
    %5 = arith.addf %2, %4 : vector<16x128xf32>
    %cst_5 = arith.constant 0.000000e+00 : f32
    %6 = vector.broadcast %cst_5 : f32 to vector<16x128xf32>
    %7 = arith.maximumf %5, %6 : vector<16x128xf32>
    %8 = arith.truncf %7 : vector<16x128xf32> to vector<16x128xbf16>
    %c0_6 = arith.constant 0 : index
    %c0_7 = arith.constant 0 : index
    %9 = vector.load %arg4[%c0_6, %c0_7] : memref<128x128xbf16, #tpu.memory_space<vmem>>, vector<128x128xbf16>
    %cst_8 = arith.constant dense<0.000000e+00> : vector<16x128xf32>
    %10 = tpu.matmul %8, %9, %cst_8 {dimension_numbers = #tpu.dot_dimension_numbers<[1], [0], [0], [1], [0, 0, 1, 1], [], []>} : vector<16x128xbf16>, vector<128x128xbf16>, vector<16x128xf32> -> vector<16x128xf32>
    %c0_9 = arith.constant 0 : index
    %c0_10 = arith.constant 0 : index
    %11 = vector.load %arg5[%c0_9, %c0_10] : memref<1x128xf32, #tpu.memory_space<vmem>>, vector<1x128xf32>
    %12 = vector.broadcast %11 : vector<1x128xf32> to vector<16x128xf32>
    %13 = arith.addf %10, %12 : vector<16x128xf32>
    %cst_11 = arith.constant 0.000000e+00 : f32
    %14 = vector.broadcast %cst_11 : f32 to vector<16x128xf32>
    %15 = arith.maximumf %13, %14 : vector<16x128xf32>
    %16 = arith.truncf %15 : vector<16x128xf32> to vector<16x128xbf16>
    %c0_12 = arith.constant 0 : index
    %c0_13 = arith.constant 0 : index
    %17 = vector.load %arg6[%c0_12, %c0_13] : memref<128x4xbf16, #tpu.memory_space<vmem>>, vector<128x4xbf16>
    %cst_14 = arith.constant dense<0.000000e+00> : vector<16x4xf32>
    %18 = tpu.matmul %16, %17, %cst_14 {dimension_numbers = #tpu.dot_dimension_numbers<[1], [0], [0], [1], [0, 0, 1, 1], [], []>} : vector<16x128xbf16>, vector<128x4xbf16>, vector<16x4xf32> -> vector<16x4xf32>
    %c0_15 = arith.constant 0 : index
    %c0_16 = arith.constant 0 : index
    %19 = vector.load %arg7[%c0_15, %c0_16] : memref<1x4xf32, #tpu.memory_space<vmem>>, vector<1x4xf32>
    %20 = vector.broadcast %19 : vector<1x4xf32> to vector<16x4xf32>
    %21 = arith.addf %18, %20 : vector<16x4xf32>
    %c0_17 = arith.constant 0 : index
    %c0_18 = arith.constant 0 : index
    %22 = vector.load %arg12[%c0_17, %c0_18] : memref<16x4xf32, #tpu.memory_space<vmem>>, vector<16x4xf32>
    tpu.vector_store %arg12[%c0_17, %c0_18], %21 {strides = array<i32>} : memref<16x4xf32, #tpu.memory_space<vmem>>, vector<16x4xf32>,
    %c0_19 = arith.constant 0 : index
    %c0_20 = arith.constant 0 : index
    %23 = vector.load %arg8[%c0_19, %c0_20] : memref<128x16xbf16, #tpu.memory_space<vmem>>, vector<128x16xbf16>
    %cst_21 = arith.constant dense<0.000000e+00> : vector<16x16xf32>
    %24 = tpu.matmul %16, %23, %cst_21 {dimension_numbers = #tpu.dot_dimension_numbers<[1], [0], [0], [1], [0, 0, 1, 1], [], []>} : vector<16x128xbf16>, vector<128x16xbf16>, vector<16x16xf32> -> vector<16x16xf32>
    %c0_22 = arith.constant 0 : index
    %c0_23 = arith.constant 0 : index
    %25 = vector.load %arg9[%c0_22, %c0_23] : memref<1x16xf32, #tpu.memory_space<vmem>>, vector<1x16xf32>
    %26 = vector.broadcast %25 : vector<1x16xf32> to vector<16x16xf32>
    %27 = arith.addf %24, %26 : vector<16x16xf32>
    %c0_24 = arith.constant 0 : index
    %c0_25 = arith.constant 0 : index
    %28 = vector.load %arg13[%c0_24, %c0_25] : memref<16x16xf32, #tpu.memory_space<vmem>>, vector<16x16xf32>
    tpu.vector_store %arg13[%c0_24, %c0_25], %27 {strides = array<i32>} : memref<16x16xf32, #tpu.memory_space<vmem>>, vector<16x16xf32>,
    %c0_26 = arith.constant 0 : index
    %c0_27 = arith.constant 0 : index
    %29 = vector.load %arg10[%c0_26, %c0_27] : memref<128x16xbf16, #tpu.memory_space<vmem>>, vector<128x16xbf16>
    %cst_28 = arith.constant dense<0.000000e+00> : vector<16x16xf32>
    %30 = tpu.matmul %16, %29, %cst_28 {dimension_numbers = #tpu.dot_dimension_numbers<[1], [0], [0], [1], [0, 0, 1, 1], [], []>} : vector<16x128xbf16>, vector<128x16xbf16>, vector<16x16xf32> -> vector<16x16xf32>
    %c0_29 = arith.constant 0 : index
    %c0_30 = arith.constant 0 : index
    %31 = vector.load %arg11[%c0_29, %c0_30] : memref<1x16xf32, #tpu.memory_space<vmem>>, vector<1x16xf32>
    %32 = vector.broadcast %31 : vector<1x16xf32> to vector<16x16xf32>
    %33 = arith.addf %30, %32 : vector<16x16xf32>
    %cst_31 = arith.constant -5.000000e+00 : f32
    %cst_32 = arith.constant 2.000000e+00 : f32
    %34 = vector.broadcast %cst_31 : f32 to vector<16x16xf32>
    %35 = arith.maximumf %34, %33 : vector<16x16xf32>
    %36 = vector.broadcast %cst_32 : f32 to vector<16x16xf32>
    %37 = arith.minimumf %36, %35 : vector<16x16xf32>
    %38 = math.exp %37 : vector<16x16xf32>
    %c0_33 = arith.constant 0 : index
    %c0_34 = arith.constant 0 : index
    %39 = vector.load %arg14[%c0_33, %c0_34] : memref<16x16xf32, #tpu.memory_space<vmem>>, vector<16x16xf32>
    tpu.vector_store %arg14[%c0_33, %c0_34], %38 {strides = array<i32>} : memref<16x16xf32, #tpu.memory_space<vmem>>, vector<16x16xf32>,
    return
  }
  func.func @transform_0(%arg0: i32) -> (i32, i32) {
    %c0_i32 = arith.constant 0 : i32
    %c0_i32_0 = arith.constant 0 : i32
    return %arg0, %c0_i32 : i32, i32
  }
  func.func @transform_1(%arg0: i32) -> (i32, i32) {
    %c0_i32 = arith.constant 0 : i32
    %c0_i32_0 = arith.constant 0 : i32
    %c0_i32_1 = arith.constant 0 : i32
    return %c0_i32, %c0_i32_0 : i32, i32
  }
  func.func @transform_2(%arg0: i32) -> (i32, i32) {
    %c0_i32 = arith.constant 0 : i32
    %c0_i32_0 = arith.constant 0 : i32
    %c0_i32_1 = arith.constant 0 : i32
    return %c0_i32, %c0_i32_0 : i32, i32
  }
  func.func @transform_3(%arg0: i32) -> (i32, i32) {
    %c0_i32 = arith.constant 0 : i32
    %c0_i32_0 = arith.constant 0 : i32
    %c0_i32_1 = arith.constant 0 : i32
    return %c0_i32, %c0_i32_0 : i32, i32
  }
  func.func @transform_4(%arg0: i32) -> (i32, i32) {
    %c0_i32 = arith.constant 0 : i32
    %c0_i32_0 = arith.constant 0 : i32
    %c0_i32_1 = arith.constant 0 : i32
    return %c0_i32, %c0_i32_0 : i32, i32
  }
  func.func @transform_5(%arg0: i32) -> (i32, i32) {
    %c0_i32 = arith.constant 0 : i32
    %c0_i32_0 = arith.constant 0 : i32
    %c0_i32_1 = arith.constant 0 : i32
    return %c0_i32, %c0_i32_0 : i32, i32
  }
  func.func @transform_6(%arg0: i32) -> (i32, i32) {
    %c0_i32 = arith.constant 0 : i32
    %c0_i32_0 = arith.constant 0 : i32
    %c0_i32_1 = arith.constant 0 : i32
    return %c0_i32, %c0_i32_0 : i32, i32
  }
  func.func @transform_7(%arg0: i32) -> (i32, i32) {
    %c0_i32 = arith.constant 0 : i32
    %c0_i32_0 = arith.constant 0 : i32
    %c0_i32_1 = arith.constant 0 : i32
    return %c0_i32, %c0_i32_0 : i32, i32
  }
  func.func @transform_8(%arg0: i32) -> (i32, i32) {
    %c0_i32 = arith.constant 0 : i32
    %c0_i32_0 = arith.constant 0 : i32
    %c0_i32_1 = arith.constant 0 : i32
    return %c0_i32, %c0_i32_0 : i32, i32
  }
  func.func @transform_9(%arg0: i32) -> (i32, i32) {
    %c0_i32 = arith.constant 0 : i32
    %c0_i32_0 = arith.constant 0 : i32
    %c0_i32_1 = arith.constant 0 : i32
    return %c0_i32, %c0_i32_0 : i32, i32
  }
  func.func @transform_10(%arg0: i32) -> (i32, i32) {
    %c0_i32 = arith.constant 0 : i32
    %c0_i32_0 = arith.constant 0 : i32
    %c0_i32_1 = arith.constant 0 : i32
    return %c0_i32, %c0_i32_0 : i32, i32
  }
  func.func @transform_11(%arg0: i32) -> (i32, i32) {
    %c0_i32 = arith.constant 0 : i32
    %c0_i32_0 = arith.constant 0 : i32
    return %arg0, %c0_i32 : i32, i32
  }
  func.func @transform_12(%arg0: i32) -> (i32, i32) {
    %c0_i32 = arith.constant 0 : i32
    %c0_i32_0 = arith.constant 0 : i32
    return %arg0, %c0_i32 : i32, i32
  }
  func.func @transform_13(%arg0: i32) -> (i32, i32) {
    %c0_i32 = arith.constant 0 : i32
    %c0_i32_0 = arith.constant 0 : i32
    return %arg0, %c0_i32 : i32, i32
  }
}

</mosaic_0001>

<bundles_post_ra>
// kernel: gmm_layer_forward.1
= control target key start
LH: loop header
LB: loop body
LE: loop exit
PB: predicated region body
PF: predicated region fallthrough
CT: control target
= control target key end

     0   :  { %v808_v0 = vmov 0.0   ;;  %vm809_vm0 = vmmov 0   ;;  %vm72_vm1 = vcmask 261120   ;;  %vm347_vm2 = vcmask 31744   ;;  %s1068_s1 = inlined_call_operand.vmem [shape: bf16[32,128], index: 1, kind: input, shape index: {}]   ;;  %s1069_s3 = inlined_call_operand.vmem [shape: bf16[128,128], index: 3, kind: input, shape index: {}]   ;;  %s1070_s0 = inlined_call_operand.vmem [shape: bf16[16,32], index: 0, kind: input, shape index: {}]   ;;  %s1071_s5 = inlined_call_operand.vmem [shape: bf16[128,4], index: 5, kind: input, shape index: {}]   ;;  %s1072_s7 = inlined_call_operand.vmem [shape: bf16[128,16], index: 7, kind: input, shape index: {}]   ;;  %s1073_s2 = inlined_call_operand.vmem [shape: f32[1,128], index: 2, kind: input, shape index: {}]   ;;  %s1074_s9 = inlined_call_operand.vmem [shape: bf16[128,16], index: 9, kind: input, shape index: {}]   ;;  %s1075_s4 = inlined_call_operand.vmem [shape: f32[1,128], index: 4, kind: input, shape index: {}]   ;;  %s1076_s6 = inlined_call_operand.vmem [shape: f32[1,4], index: 6, kind: input, shape index: {}]   ;;  %s1077_s8 = inlined_call_operand.vmem [shape: f32[1,16], index: 8, kind: input, shape index: {}]   ;;  %s1078_s11 = inlined_call_operand.vmem [shape: f32[16,4], index: 11, kind: output, shape index: {0}]   ;;  %s1079_s12 = inlined_call_operand.vmem [shape: f32[16,16], index: 12, kind: output, shape index: {1}]   ;;  %s1080_s10 = inlined_call_operand.vmem [shape: f32[1,16], index: 10, kind: input, shape index: {}]   ;;  %s1081_s13 = inlined_call_operand.vmem [shape: f32[16,16], index: 13, kind: output, shape index: {2}]  }
   0x1   :  { %679 = vmatprep.subr.bf16.mxu0 %v808_v0  ;;  %v769_v1 = vld [vmem:[%s1068_s1] sm:$0xff]   ;;  %683 = vmatprep.mubr.msk.bf16.mxu0 %vm809_vm0, %v808_v0  ;;  %v770_v2 = vld [vmem:[%s1068_s1 + $0x8] sm:$0xff]   ;;  %v774_v6 = vld [vmem:[%s1069_s3 + $0x10] sm:$0xff]   ;;  %vm462_vm3 = vcmask 130048  }
   0x2   :  { %687 = vmatprep.subr.bf16.mxu1 %v808_v0  ;;  %703 = vmatprep.mubr.msk.bf16.mxu1 %vm809_vm0, %v808_v0  ;;  %v772_v3 = vld [vmem:[%s1069_s3] sm:$0xff]   ;;  %v773_v5 = vld [vmem:[%s1069_s3 + $0x8] sm:$0xff]   ;;  %v775_v7 = vld [vmem:[%s1069_s3 + $0x18] sm:$0xff]  }
   0x3   :  { %680 = vmatpush3.bf16.msra.mxu0 %v769_v1  ;;  %v771_v4 = vld [vmem:[%s1070_s0] sm:$0xff]   ;;  %688 = vmatpush3.bf16.msra.mxu1 %v772_v3  ;;  %v777_v9 = vld [vmem:[%s1069_s3 + $0x28] sm:$0xff]   ;;  %v778_v10 = vld [vmem:[%s1069_s3 + $0x30] sm:$0xff]  }
   0x4   :  { %681 = vmatprep.subr.bf16.mxu0 %v808_v0  ;;  %689 = vmatprep.subr.bf16.mxu1 %v808_v0  ;;  %v776_v8 = vld [vmem:[%s1069_s3 + $0x20] sm:$0xff]   ;;  %v779_v11 = vld [vmem:[%s1069_s3 + $0x38] sm:$0xff]   ;;  %v782_v13 = vld [vmem:[%s1071_s5 + $0x8] sm:$0xff]  }
   0x5   :  { %v780_v12 = vld [vmem:[%s1071_s5] sm:$0xff]   ;;  %v784_v14 = vld [vmem:[%s1071_s5 + $0x10] sm:$0xff]   ;;  %v786_v15 = vld [vmem:[%s1071_s5 + $0x18] sm:$0xff]  }
   0x6   :  { %v788_v16 = vld [vmem:[%s1071_s5 + $0x20] sm:$0xff]   ;;  %v790_v17 = vld [vmem:[%s1071_s5 + $0x28] sm:$0xff]   ;;  %v785_v30 = vld [vmem:[%s1072_s7 + $0x10] sm:$0xff]  }
   0x7   :  { %682 = vmatpush3.bf16.msra.mxu0 %v770_v2  ;;  %690 = vmatpush3.bf16.msra.mxu1 %v773_v5  ;;  %v599_v18 = vld [vmem:[%s1073_s2] ss:$0 sm:$0xff]  ;;  %v783_v29 = vld [vmem:[%s1072_s7 + $0x8] sm:$0xff]   ;;  %v787_v31 = vld [vmem:[%s1072_s7 + $0x18] sm:$0xff]  }
   0x8   :  { %707 = vmatprep.subr.bf16.mxu0 %v808_v0  ;;  %691 = vmatprep.subr.bf16.mxu1 %v808_v0  ;;  %v781_v27 = vld [vmem:[%s1072_s7] sm:$0xff]   ;;  %v791_v33 = vld [vmem:[%s1072_s7 + $0x28] sm:$0xff]   ;;  %v792_v34 = vld [vmem:[%s1071_s5 + $0x30] sm:$0xff]  }
   0x9   :  { %v789_v32 = vld [vmem:[%s1072_s7 + $0x20] sm:$0xff]   ;;  %v793_v35 = vld [vmem:[%s1072_s7 + $0x30] sm:$0xff]   ;;  %v794_v36 = vld [vmem:[%s1071_s5 + $0x38] sm:$0xff]  }
   0xa   :  { %684 = vmatmul.mubr.msk.bf16.vlgmr.msra.gmra.mrb[0].mxu0 %vm72_vm1, %v771_v4  ;;  %v795_v37 = vld [vmem:[%s1072_s7 + $0x38] sm:$0xff]   ;;  %v604_v38 = vld [vmem:[%s1075_s4] ss:$0 sm:$0xff]  ;;  %v797_v49 = vld [vmem:[%s1074_s9 + $0x8] sm:$0xff]  }
   0xb   :  { %723 = vmatprep.mubr.msk.bf16.mxu0 %vm809_vm0, %v808_v0  ;;  %692 = vmatpush3.bf16.msra.mxu1 %v774_v6  ;;  %v796_v47 = vld [vmem:[%s1074_s9] sm:$0xff]   ;;  %v798_v50 = vld [vmem:[%s1074_s9 + $0x10] sm:$0xff]   ;;  %v799_v51 = vld [vmem:[%s1074_s9 + $0x18] sm:$0xff]  }
   0xc   :  { %693 = vmatprep.subr.bf16.mxu1 %v808_v0  ;;  %708 = vmatpush3.bf16.msra.mxu0 %v780_v12  ;;  %v800_v52 = vld [vmem:[%s1074_s9 + $0x20] sm:$0xff]   ;;  %v801_v53 = vld [vmem:[%s1074_s9 + $0x28] sm:$0xff]   ;;  %v802_v54 = vld [vmem:[%s1074_s9 + $0x30] sm:$0xff]  }
   0xd   :  { %709 = vmatprep.subr.bf16.mxu0 %v808_v0  ;;  %v803_v55 = vld [vmem:[%s1074_s9 + $0x38] sm:$0xff]   ;;  %v613_v56 = vld [vmem:[%s1076_s6] ss:$0 sm:$0xff] }
   0xe   :  { %v622_v57 = vld [vmem:[%s1077_s8] ss:$0 sm:$0xff] }
   0xf   :  { %694 = vmatpush3.bf16.msra.mxu1 %v775_v7  ;;  %v631_v6 = vld [vmem:[%s1080_s10] ss:$0 sm:$0xff] }
  0x10   :  { %695 = vmatprep.subr.bf16.mxu1 %v808_v0  ;;  %710 = vmatpush3.bf16.msra.mxu0 %v782_v13 }
  0x11   :  { %711 = vmatprep.subr.bf16.mxu0 %v808_v0 }
  0x13   :  { %696 = vmatpush3.bf16.msra.mxu1 %v776_v8 }
  0x14   :  { %697 = vmatprep.subr.bf16.mxu1 %v808_v0  ;;  %712 = vmatpush3.bf16.msra.mxu0 %v784_v14 }
  0x15   :  { %713 = vmatprep.subr.bf16.mxu0 %v808_v0 }
  0x17   :  { %698 = vmatpush3.bf16.msra.mxu1 %v777_v9 }
  0x18   :  { %699 = vmatprep.subr.bf16.mxu1 %v808_v0  ;;  %714 = vmatpush3.bf16.msra.mxu0 %v786_v15 }
  0x19   :  { %715 = vmatprep.subr.bf16.mxu0 %v808_v0 }
  0x1b   :  { %700 = vmatpush3.bf16.msra.mxu1 %v778_v10 }
  0x1c   :  { %701 = vmatprep.subr.bf16.mxu1 %v808_v0  ;;  %716 = vmatpush3.bf16.msra.mxu0 %v788_v16 }
  0x1d   :  { %717 = vmatprep.subr.bf16.mxu0 %v808_v0 }
  0x1f   :  { %702 = vmatpush3.bf16.msra.mxu1 %v779_v11 }
  0x20   :  { %727 = vmatprep.subr.bf16.mxu1 %v808_v0  ;;  %718 = vmatpush3.bf16.msra.mxu0 %v790_v17 }
  0x21   :  { %719 = vmatprep.subr.bf16.mxu0 %v808_v0 }
  0x24   :  { %720 = vmatpush3.bf16.msra.mxu0 %v792_v34 }
  0x25   :  { %721 = vmatprep.subr.bf16.mxu0 %v808_v0 }
  0x28   :  { %722 = vmatpush3.bf16.msra.mxu0 %v794_v36 }
  0x29   :  { %747 = vmatprep.subr.bf16.mxu0 %v808_v0 }
  0xdd   :  { %v110_v19 = vpop.f32.mrb[0].mxu0 }
  0xde   :  { %v111_v20 = vadd.f32 %v599_v18, %v110_v19  ;;  %v685_v21 = vpop.f32.mrb[1].mxu0 }
  0xdf   :  { %v113_v22 = vpop.f32.mrb[2].mxu0 }
  0xe0   :  { %v114_v23 = vadd.f32 %v599_v18, %v113_v22  ;;  %v686_v24 = vpop.f32.mrb[3].mxu0  ;;  %v117_v25 = vmax.f32 %v111_v20, 0.0 }
  0xe2   :  { %v118_v26 = vmax.f32 %v114_v23, 0.0 }
  0xe4   :  { %v119_v28 = vpack.c.bf16 %v118_v26, %v117_v25 }
  0xe6   :  { %704 = vmatmul.mubr.bf16.vlgmr.msra.gmra.mrb[0].mxu1 %v119_v28 }
  0xe7   :  { %728 = vmatpush3.bf16.msra.mxu1 %v781_v27  ;;  %743 = vmatprep.mubr.msk.bf16.mxu1 %vm809_vm0, %v808_v0 }
  0xe8   :  { %729 = vmatprep.subr.bf16.mxu1 %v808_v0 }
  0xeb   :  { %730 = vmatpush3.bf16.msra.mxu1 %v783_v29 }
  0xec   :  { %731 = vmatprep.subr.bf16.mxu1 %v808_v0 }
  0xef   :  { %732 = vmatpush3.bf16.msra.mxu1 %v785_v30 }
  0xf0   :  { %733 = vmatprep.subr.bf16.mxu1 %v808_v0 }
  0xf3   :  { %734 = vmatpush3.bf16.msra.mxu1 %v787_v31 }
  0xf4   :  { %735 = vmatprep.subr.bf16.mxu1 %v808_v0 }
  0xf7   :  { %736 = vmatpush3.bf16.msra.mxu1 %v789_v32 }
  0xf8   :  { %737 = vmatprep.subr.bf16.mxu1 %v808_v0 }
  0xfb   :  { %738 = vmatpush3.bf16.msra.mxu1 %v791_v33 }
  0xfc   :  { %739 = vmatprep.subr.bf16.mxu1 %v808_v0 }
  0xff   :  { %740 = vmatpush3.bf16.msra.mxu1 %v793_v35 }
 0x100   :  { %741 = vmatprep.subr.bf16.mxu1 %v808_v0 }
 0x103   :  { %742 = vmatpush3.bf16.msra.mxu1 %v795_v37 }
 0x1b9   :  { %v225_v39 = vpop.f32.mrb[0].mxu1 }
 0x1ba   :  { %v226_v40 = vadd.f32 %v604_v38, %v225_v39  ;;  %v705_v41 = vpop.f32.mrb[1].mxu1 }
 0x1bb   :  { %v228_v42 = vpop.f32.mrb[2].mxu1 }
 0x1bc   :  { %v229_v43 = vadd.f32 %v604_v38, %v228_v42  ;;  %v706_v44 = vpop.f32.mrb[3].mxu1  ;;  %v232_v45 = vmax.f32 %v226_v40, 0.0 }
 0x1be   :  { %v233_v46 = vmax.f32 %v229_v43, 0.0 }
 0x1c0   :  { %v234_v48 = vpack.c.bf16 %v233_v46, %v232_v45 }
 0x1c2   :  { %724 = vmatmul.mubr.bf16.vlgmr.msra.gmra.mrb[4].mxu0 %v234_v48  ;;  %744 = vmatmul.mubr.bf16.vlgmr.msra.gmra.mrb[4].mxu1 %v234_v48 }
 0x1c3   :  { %748 = vmatpush3.bf16.msra.mxu0 %v796_v47  ;;  %763 = vmatprep.mubr.msk.bf16.mxu0 %vm809_vm0, %v808_v0 }
 0x1c4   :  { %749 = vmatprep.subr.bf16.mxu0 %v808_v0 }
 0x1c7   :  { %750 = vmatpush3.bf16.msra.mxu0 %v797_v49 }
 0x1c8   :  { %751 = vmatprep.subr.bf16.mxu0 %v808_v0 }
 0x1cb   :  { %752 = vmatpush3.bf16.msra.mxu0 %v798_v50 }
 0x1cc   :  { %753 = vmatprep.subr.bf16.mxu0 %v808_v0 }
 0x1cf   :  { %754 = vmatpush3.bf16.msra.mxu0 %v799_v51 }
 0x1d0   :  { %755 = vmatprep.subr.bf16.mxu0 %v808_v0 }
 0x1d3   :  { %756 = vmatpush3.bf16.msra.mxu0 %v800_v52 }
 0x1d4   :  { %757 = vmatprep.subr.bf16.mxu0 %v808_v0 }
 0x1d7   :  { %758 = vmatpush3.bf16.msra.mxu0 %v801_v53 }
 0x1d8   :  { %759 = vmatprep.subr.bf16.mxu0 %v808_v0 }
 0x1db   :  { %760 = vmatpush3.bf16.msra.mxu0 %v802_v54 }
 0x1dc   :  { %761 = vmatprep.subr.bf16.mxu0 %v808_v0 }
 0x1df   :  { %762 = vmatpush3.bf16.msra.mxu0 %v803_v55 }
 0x1e2   :  { %764 = vmatmul.mubr.bf16.vlgmr.msra.gmra.mrb[8].mxu0 %v234_v48 }
 0x295   :  { %v340_v58 = vpop.f32.mrb[4].mxu0  ;;  %v455_v59 = vpop.f32.mrb[4].mxu1 }
 0x296   :  { %v341_v60 = vadd.f32 %v613_v56, %v340_v58  ;;  %v456_v61 = vadd.f32 %v622_v57, %v455_v59  ;;  %v725_v62 = vpop.f32.mrb[5].mxu0  ;;  %v745_v63 = vpop.f32.mrb[5].mxu1 }
 0x297   :  { %v343_v1 = vpop.f32.mrb[6].mxu0  ;;  %v458_v0 = vpop.f32.mrb[6].mxu1 }
 0x298   :  { %348 = vst.msk [vmem:[%s1078_s11] sm:$0xff] %vm347_vm2, %v341_v60  ;;  %v344_v2 = vadd.f32 %v613_v56, %v343_v1  ;;  %v459_v3 = vadd.f32 %v622_v57, %v458_v0  ;;  %v726_v4 = vpop.f32.mrb[7].mxu0  ;;  %v746_v5 = vpop.f32.mrb[7].mxu1 }
 0x299   :  { %463 = vst.msk [vmem:[%s1079_s12] sm:$0xff] %vm462_vm3, %v456_v61 }
 0x29a   :  { %349 = vst.msk [vmem:[%s1078_s11 + $0x8] sm:$0xff] %vm347_vm2, %v344_v2 }
 0x29b   :  { %464 = vst.msk [vmem:[%s1079_s12 + $0x8] sm:$0xff] %vm462_vm3, %v459_v3 }
 0x2b5   :  { %v570_v7 = vpop.f32.mrb[8].mxu0 }
 0x2b6   :  { %v571_v8 = vadd.f32 %v631_v6, %v570_v7  ;;  %v765_v9 = vpop.f32.mrb[9].mxu0 }
 0x2b7   :  { %v573_v10 = vpop.f32.mrb[10].mxu0 }
 0x2b8   :  { %v577_v11 = vmax.f32 %v571_v8, -5.0  ;;  %v574_v12 = vadd.f32 %v631_v6, %v573_v10  ;;  %v766_v13 = vpop.f32.mrb[11].mxu0 }
 0x2ba   :  { %v579_v14 = vmin.f32 %v577_v11, 2.0  ;;  %v578_v15 = vmax.f32 %v574_v12, -5.0 }
 0x2bc   :  { %v581_v16 = vmul.f32 1.442695, %v579_v14  ;;  %v580_v17 = vmin.f32 %v578_v15, 2.0 }
 0x2be   :  { %804 = vpow2.f32 %v581_v16  ;;  %v583_v18 = vmul.f32 1.442695, %v580_v17 }
 0x2c0   :  { %806 = vpow2.f32 %v583_v18 }
 0x2c8   :  { %v805_v19 = vpop.eup %804 }
 0x2c9   :  { %585 = vst.msk [vmem:[%s1081_s13] sm:$0xff] %vm462_vm3, %v805_v19 }
 0x2ca   :  { %v807_v20 = vpop.eup %806 }
 0x2cb   :  { %586 = vst.msk [vmem:[%s1081_s13 + $0x8] sm:$0xff] %vm462_vm3, %v807_v20 }

</bundles_post_ra>
